<compile_context>
chip_gen: v7x
topology: tpu7x:2x2x1
jax: 0.10.0
libtpu: 0.0.40
codegen_flags: <defaults>
</compile_context>

<pallas_src>
from functools import partial

import jax
import jax.numpy as jnp
from jax.experimental import pallas as pl
from jax.experimental.pallas import tpu as pltpu


# ----------------------------------------------------------------------------
# Pallas kernel
# ----------------------------------------------------------------------------
def _scale_skip_kernel(x_ref, y_ref, xs_ref, xb_ref, ys_ref, yb_ref, o_ref):
    # x_ref/y_ref/o_ref: (tr, tl) tiles; xs/xb/ys/yb: (tr, 1) per-row scale/bias.
    x = x_ref[...]
    y = y_ref[...]
    o_ref[...] = (x * xs_ref[...] + xb_ref[...]) + (y * ys_ref[...] + yb_ref[...])


def _pick_tiles(R, L, itemsize, target_block_bytes):
    """Choose (tr, tl) row/lane tile sizes obeying the (8,128) rule."""
    # Lane (last-dim) tile: keep the full row unless it is huge and 128-divisible.
    if L % 128 == 0:
        tl_cap = max(128, ((target_block_bytes // (8 * itemsize)) // 128) * 128)
        tl = min(L, tl_cap)
    else:
        tl = L  # full extent is always legal
    # Row (sublane) tile: as many rows as fit the per-block budget.
    rows_fit = max(1, target_block_bytes // (tl * itemsize))
    if rows_fit >= R:
        tr = R                      # full extent -> legal regardless of 8-alignment
    elif rows_fit >= 8:
        tr = (rows_fit // 8) * 8    # multiple of 8 sublanes
    else:
        tr = 8 if R >= 8 else R     # fallback for pathologically wide rows
    return tr, tl


def scale_skip_2d(x, y, x_scale, x_bias, y_scale, y_bias,
                  *, target_block_bytes=2 << 20):
    """ScaleSkip2D forward.  x, y: (B, C, H, W); params broadcastable to (1, C, 1, 1)."""
    assert x.shape == y.shape and x.ndim == 4
    B, C, H, W = x.shape
    R, L = B * C, H * W
    out_dtype = jnp.result_type(x.dtype, y.dtype)

    # Flatten NCHW -> (rows = B*C, lanes = H*W).  Pure view, no data movement.
    x2 = x.reshape(R, L).astype(out_dtype)
    y2 = y.reshape(R, L).astype(out_dtype)

    # Per-row (i.e. per (b, c)) scale / bias column vectors -- R elements only.
    def per_row(p):
        return jnp.broadcast_to(jnp.reshape(p, (1, C)), (B, C)).reshape(R, 1).astype(out_dtype)

    xs, xb, ys, yb = (per_row(p) for p in (x_scale, x_bias, y_scale, y_bias))

    itemsize = jnp.dtype(out_dtype).itemsize
    tr, tl = _pick_tiles(R, L, itemsize, target_block_bytes)
    grid = (pl.cdiv(R, tr), pl.cdiv(L, tl))

    data_spec = pl.BlockSpec((tr, tl), lambda i, j: (i, j))
    prm_spec = pl.BlockSpec((tr, 1), lambda i, j: (i, 0))

    out = pl.pallas_call(
        _scale_skip_kernel,
        out_shape=jax.ShapeDtypeStruct((R, L), out_dtype),
        grid=grid,
        in_specs=[data_spec, data_spec, prm_spec, prm_spec, prm_spec, prm_spec],
        out_specs=data_spec,
        compiler_params=pltpu.CompilerParams(
            dimension_semantics=("parallel", "parallel")),
    )(x2, y2, xs, xb, ys, yb)

    return out.reshape(B, C, H, W)


# ----------------------------------------------------------------------------
# reference + test harness
# ----------------------------------------------------------------------------
def scale_skip_2d_ref(x, y, x_scale, x_bias, y_scale, y_bias):
    return x * x_scale + x_bias + (y * y_scale + y_bias)


def _trunc_normal(key, shape, mean, std):
    # matches nn.init.trunc_normal_ (truncation at +-2 std) closely enough for a test
    return mean + std * jnp.clip(jax.random.normal(key, shape, jnp.float32), -2.0, 2.0)


def _make_case(key, B, C, H, W):
    ks = jax.random.split(key, 6)
    x = jax.random.normal(ks[0], (B, C, H, W), jnp.float32)
    y = jax.random.normal(ks[1], (B, C, H, W), jnp.float32)
    x_scale = _trunc_normal(ks[2], (1, C, 1, 1), 1.0, 0.01)
    y_scale = _trunc_normal(ks[3], (1, C, 1, 1), 1.0, 0.01)
    x_bias = _trunc_normal(ks[4], (1, C, 1, 1), 0.0, 0.01)
    y_bias = _trunc_normal(ks[5], (1, C, 1, 1), 0.0, 0.01)
    return x, y, x_scale, x_bias, y_scale, y_bias


if __name__ == "__main__":
    root = jax.random.PRNGKey(0)
    k0, k1, k2 = jax.random.split(root, 3)

    # 1) Module-sized case: B=2, C=4, H=W=16  (R=8 rows, L=256 lanes, single block).
    args = _make_case(k0, 2, 4, 16, 16)
    fwd = jax.jit(scale_skip_2d)
    out = fwd(*args)
    jax.block_until_ready(out)
    ref = scale_skip_2d_ref(*args)
    assert out.shape == (2, 4, 16, 16) and out.dtype == jnp.float32
    assert bool(jnp.all(jnp.isfinite(out)))
    assert jnp.allclose(out, ref, atol=1e-6, rtol=1e-6)

    # 2) Row-tiled + ragged-edge path: R=20 rows (grid of 3 x 8-row blocks), L=256.
    args2 = _make_case(k1, 5, 4, 16, 16)
    fwd_small_blocks = jax.jit(partial(scale_skip_2d, target_block_bytes=8 << 10))
    out2 = fwd_small_blocks(*args2)
    jax.block_until_ready(out2)
    assert jnp.allclose(out2, scale_skip_2d_ref(*args2), atol=1e-6, rtol=1e-6)

    # 3) Row + lane tiled path: R=16, L=512 -> 2x2 parallel grid of (8, 256) blocks.
    args3 = _make_case(k2, 2, 8, 16, 32)
    out3 = fwd_small_blocks(*args3)
    jax.block_until_ready(out3)
    assert jnp.allclose(out3, scale_skip_2d_ref(*args3), atol=1e-6, rtol=1e-6)

    print("KERNEL_OK")
</pallas_src>

<mosaic_0001>
module attributes {stable_mosaic.version = 11 : i64} {
  func.func @_scale_skip_kernel(%arg0: i32, %arg1: i32, %arg2: memref<8x256xf32, #tpu.memory_space<vmem>>, %arg3: memref<8x256xf32, #tpu.memory_space<vmem>>, %arg4: memref<8x1xf32, #tpu.memory_space<vmem>>, %arg5: memref<8x1xf32, #tpu.memory_space<vmem>>, %arg6: memref<8x1xf32, #tpu.memory_space<vmem>>, %arg7: memref<8x1xf32, #tpu.memory_space<vmem>>, %arg8: memref<8x256xf32, #tpu.memory_space<vmem>>) attributes {dimension_semantics = [#tpu.dimension_semantics<parallel>, #tpu.dimension_semantics<parallel>], iteration_bounds = array<i64: 1, 1>, scalar_prefetch = 0 : i64, scratch_operands = 0 : i64, tpu.core_type = #tpu.core_type<tc>, window_params = [{transform_indices = @transform_0, window_bounds = array<i64: 8, 256>}, {transform_indices = @transform_1, window_bounds = array<i64: 8, 256>}, {transform_indices = @transform_2, window_bounds = array<i64: 8, 1>}, {transform_indices = @transform_3, window_bounds = array<i64: 8, 1>}, {transform_indices = @transform_4, window_bounds = array<i64: 8, 1>}, {transform_indices = @transform_5, window_bounds = array<i64: 8, 1>}, {transform_indices = @transform_6, window_bounds = array<i64: 8, 256>}]} {
    %c0 = arith.constant 0 : index
    %c0_0 = arith.constant 0 : index
    %0 = vector.load %arg2[%c0, %c0_0] : memref<8x256xf32, #tpu.memory_space<vmem>>, vector<8x256xf32>
    %c0_1 = arith.constant 0 : index
    %c0_2 = arith.constant 0 : index
    %1 = vector.load %arg3[%c0_1, %c0_2] : memref<8x256xf32, #tpu.memory_space<vmem>>, vector<8x256xf32>
    %c0_3 = arith.constant 0 : index
    %c0_4 = arith.constant 0 : index
    %2 = vector.load %arg4[%c0_3, %c0_4] : memref<8x1xf32, #tpu.memory_space<vmem>>, vector<8x1xf32>
    %3 = vector.broadcast %2 : vector<8x1xf32> to vector<8x256xf32>
    %4 = arith.mulf %0, %3 : vector<8x256xf32>
    %c0_5 = arith.constant 0 : index
    %c0_6 = arith.constant 0 : index
    %5 = vector.load %arg5[%c0_5, %c0_6] : memref<8x1xf32, #tpu.memory_space<vmem>>, vector<8x1xf32>
    %6 = vector.broadcast %5 : vector<8x1xf32> to vector<8x256xf32>
    %7 = arith.addf %4, %6 : vector<8x256xf32>
    %c0_7 = arith.constant 0 : index
    %c0_8 = arith.constant 0 : index
    %8 = vector.load %arg6[%c0_7, %c0_8] : memref<8x1xf32, #tpu.memory_space<vmem>>, vector<8x1xf32>
    %9 = vector.broadcast %8 : vector<8x1xf32> to vector<8x256xf32>
    %10 = arith.mulf %1, %9 : vector<8x256xf32>
    %c0_9 = arith.constant 0 : index
    %c0_10 = arith.constant 0 : index
    %11 = vector.load %arg7[%c0_9, %c0_10] : memref<8x1xf32, #tpu.memory_space<vmem>>, vector<8x1xf32>
    %12 = vector.broadcast %11 : vector<8x1xf32> to vector<8x256xf32>
    %13 = arith.addf %10, %12 : vector<8x256xf32>
    %14 = arith.addf %7, %13 : vector<8x256xf32>
    %c0_11 = arith.constant 0 : index
    %c0_12 = arith.constant 0 : index
    %15 = vector.load %arg8[%c0_11, %c0_12] : memref<8x256xf32, #tpu.memory_space<vmem>>, vector<8x256xf32>
    tpu.vector_store %arg8[%c0_11, %c0_12], %14 {strides = array<i32>} : memref<8x256xf32, #tpu.memory_space<vmem>>, vector<8x256xf32>,
    return
  }
  func.func @transform_0(%arg0: i32, %arg1: i32) -> (i32, i32) {
    %c0_i32 = arith.constant 0 : i32
    return %arg0, %arg1 : i32, i32
  }
  func.func @transform_1(%arg0: i32, %arg1: i32) -> (i32, i32) {
    %c0_i32 = arith.constant 0 : i32
    return %arg0, %arg1 : i32, i32
  }
  func.func @transform_2(%arg0: i32, %arg1: i32) -> (i32, i32) {
    %c0_i32 = arith.constant 0 : i32
    %c0_i32_0 = arith.constant 0 : i32
    return %arg0, %c0_i32 : i32, i32
  }
  func.func @transform_3(%arg0: i32, %arg1: i32) -> (i32, i32) {
    %c0_i32 = arith.constant 0 : i32
    %c0_i32_0 = arith.constant 0 : i32
    return %arg0, %c0_i32 : i32, i32
  }
  func.func @transform_4(%arg0: i32, %arg1: i32) -> (i32, i32) {
    %c0_i32 = arith.constant 0 : i32
    %c0_i32_0 = arith.constant 0 : i32
    return %arg0, %c0_i32 : i32, i32
  }
  func.func @transform_5(%arg0: i32, %arg1: i32) -> (i32, i32) {
    %c0_i32 = arith.constant 0 : i32
    %c0_i32_0 = arith.constant 0 : i32
    return %arg0, %c0_i32 : i32, i32
  }
  func.func @transform_6(%arg0: i32, %arg1: i32) -> (i32, i32) {
    %c0_i32 = arith.constant 0 : i32
    return %arg0, %arg1 : i32, i32
  }
}

</mosaic_0001>

<bundles_post_ra>
// kernel: scale_skip_2d.1
= control target key start
LH: loop header
LB: loop body
LE: loop exit
PB: predicated region body
PF: predicated region fallthrough
CT: control target
= control target key end

     0   :  { %v70_v0 = vmov 0   ;;  %s136_s3 = inlined_call_operand.vmem [shape: f32[8,1], index: 3, kind: input, shape index: {}]   ;;  %s137_s2 = inlined_call_operand.vmem [shape: f32[8,1], index: 2, kind: input, shape index: {}]   ;;  %s138_s5 = inlined_call_operand.vmem [shape: f32[8,1], index: 5, kind: input, shape index: {}]   ;;  %s139_s4 = inlined_call_operand.vmem [shape: f32[8,1], index: 4, kind: input, shape index: {}]   ;;  %s140_s0 = inlined_call_operand.vmem [shape: f32[8,256], index: 0, kind: input, shape index: {}]   ;;  %s141_s1 = inlined_call_operand.vmem [shape: f32[8,256], index: 1, kind: input, shape index: {}]   ;;  %s142_s6 = inlined_call_operand.vmem [shape: f32[8,256], index: 6, kind: output, shape index: {}]  }
   0x1   :  { %69 = vset.pattern.permute.xlu1 %v70_v0  ;;  %68 = vset.pattern.permute.xlu0 %v70_v0  ;;  %v35_v1 = vld [vmem:[%s136_s3] sm:$0xff]  ;;  %v24_v8 = vld [vmem:[%s140_s0 + $0x8] sm:$0xff] }
   0x2   :  { %v27_v2 = vld [vmem:[%s137_s2] sm:$0xff]  ;;  %38 = vperm.xlu1 %69, %v35_v1   ;;  %v26_v10 = vld [vmem:[%s141_s1 + $0x8] sm:$0xff] }
   0x3   :  { %30 = vperm.xlu0 %68, %v27_v2   ;;  %v51_v3 = vld [vmem:[%s138_s5] sm:$0xff] }
   0x4   :  { %v43_v4 = vld [vmem:[%s139_s4] sm:$0xff] }
   0x5   :  { %v23_v7 = vld [vmem:[%s140_s0] sm:$0xff] }
   0x6   :  { %54 = vperm.xlu1 %69, %v51_v3   ;;  %v25_v9 = vld [vmem:[%s141_s1] sm:$0xff] }
   0x7   :  { %46 = vperm.xlu0 %68, %v43_v4  }
  0x81   :  { %v39_v5 = vpop.permute.xlu1 %38 }
  0x82   :  { %v31_v6 = vpop.permute.xlu0 %30 }
  0x83   :  { %v33_v11 = vmul.f32 %v31_v6, %v23_v7  ;;  %v34_v12 = vmul.f32 %v31_v6, %v24_v8 }
  0x85   :  { %v55_v16 = vpop.permute.xlu1 %54  ;;  %v41_v17 = vadd.f32 %v39_v5, %v33_v11  ;;  %v42_v18 = vadd.f32 %v39_v5, %v34_v12 }
  0x86   :  { %v47_v13 = vpop.permute.xlu0 %46 }
  0x87   :  { %v49_v14 = vmul.f32 %v47_v13, %v25_v9  ;;  %v50_v15 = vmul.f32 %v47_v13, %v26_v10 }
  0x89   :  { %v57_v19 = vadd.f32 %v55_v16, %v49_v14  ;;  %v58_v20 = vadd.f32 %v55_v16, %v50_v15 }
  0x8b   :  { %v59_v21 = vadd.f32 %v57_v19, %v41_v17  ;;  %v60_v22 = vadd.f32 %v58_v20, %v42_v18 }
  0x8d   :  { %61 = vst [vmem:[%s142_s6] sm:$0xff] %v59_v21  ;;  %62 = vst [vmem:[%s142_s6 + $0x8] sm:$0xff] %v60_v22 }

</bundles_post_ra>
